<compile_context>
chip_gen: v5e
topology: v5e:2x2
jax: 0.10.0
libtpu: 0.0.40
codegen_flags: <defaults>
</compile_context>

<pallas_src>
import functools

import jax
import jax.numpy as jnp
from jax.experimental import pallas as pl
from jax.experimental.pallas import tpu as pltpu


def _poly1_ce_kernel(logits_ref, labels_ref, out_ref, *, epsilon: float):
    # logits_ref: (TN, C) input dtype, labels_ref: (TN, 1) int32, out_ref: (TN, 1) f32
    native = logits_ref[...]                                   # (TN, C) native dtype
    labels = labels_ref[...]                                   # (TN, 1) int32

    # Row max on the native dtype (exact in bf16), then upcast once to f32.
    m = jnp.max(native, axis=-1, keepdims=True).astype(jnp.float32)   # (TN, 1)
    logits = native.astype(jnp.float32)                        # (TN, C) f32 working copy

    # logits[label] via fused iota-compare + select + sum (no one-hot temp, no gather).
    # TODO(synk): iota could be hoisted into a persistent VMEM scratch on v7x if a
    # bundle dump shows VALU as the saturating slot.
    class_ids = jax.lax.broadcasted_iota(jnp.int32, logits.shape, 1)
    logit_at_label = jnp.sum(
        jnp.where(class_ids == labels, logits, 0.0), axis=-1, keepdims=True)

    # Numerically-stable logsumexp (ragged C lanes masked by Mosaic).
    denom = jnp.sum(jnp.exp(logits - m), axis=-1, keepdims=True)
    logsumexp = m + jnp.log(denom)                             # (TN, 1)

    # CE = logsumexp - logits[label]   (== F.cross_entropy reduction='none')
    # pt = softmax(logits)[label]      == exp(-CE)
    ce = logsumexp - logit_at_label                            # (TN, 1)
    pt = jnp.exp(-ce)                                          # (TN, 1)

    out_ref[...] = (ce + epsilon * (1.0 - pt)).astype(out_ref.dtype)


def _vmem_capacity_bytes() -> int:
    """Physical VMEM per TensorCore; conservative (v7x-sized) fallback."""
    try:
        cap = getattr(pltpu.get_tpu_info(), "vmem_capacity_bytes", None)
        if cap:
            return int(cap)
    except Exception:
        pass
    return 64 * 1024 * 1024


def _round8_up(x: int) -> int:
    return -(-x // 8) * 8


def _auto_tile_n(n_rows: int, num_classes: int, vmem_cap: int) -> int:
    """Pick a row-tile size from the chip's VMEM capacity.

    128 MiB chips (v5e/v6e): ~12 MiB f32 working tile, rows up to 8192.
    64 MiB chips (v7x):      ~5 MiB  f32 working tile, rows up to 2048
    (live VMEM is ~4-5x the tile budget once double-buffered input + temps
    are counted, so the v5e/v6e budget would not fit on v7x).
    """
    c_lanes = -(-num_classes // 128) * 128            # lane-padded width
    if vmem_cap >= 96 * 1024 * 1024:
        budget_bytes, max_tile = 12 * 1024 * 1024, 8192
    else:
        budget_bytes, max_tile = 5 * 1024 * 1024, 2048
    rows = budget_bytes // (c_lanes * 4)
    rows = max(8, min(max_tile, rows))
    # Guarantee >= 2 grid tiles so v7x's two TensorCores both get work
    # (one extra ~0.35 us grid step elsewhere: negligible).
    if n_rows > 8:
        rows = min(rows, _round8_up(pl.cdiv(n_rows, 2)))
    rows = min(rows, _round8_up(n_rows))
    return max(8, (rows // 8) * 8)


def poly1_cross_entropy_loss(logits, labels, *, num_classes: int,
                             epsilon: float = 1.0, reduction: str = "none",
                             tile_n: int | None = None):
    """Pallas TPU implementation of Poly1CrossEntropyLoss.forward.

    logits: [N, num_classes] (f32 or bf16), labels: [N] integer.
    Returns per-row loss in f32 (or its mean/sum, per `reduction`).
    """
    N, C = logits.shape
    assert C == num_classes

    vmem_cap = _vmem_capacity_bytes()
    if tile_n is None:
        tile_n = _auto_tile_n(N, C, vmem_cap)
    else:
        tile_n = max(8, (min(tile_n, _round8_up(N)) // 8) * 8)

    num_tiles = pl.cdiv(N, tile_n)          # ragged last block handled by Pallas
    labels_2d = labels.astype(jnp.int32).reshape(N, 1)

    vmem_limit = (96 * 1024 * 1024 if vmem_cap >= 96 * 1024 * 1024
                  else 48 * 1024 * 1024)

    out = pl.pallas_call(
        functools.partial(_poly1_ce_kernel, epsilon=float(epsilon)),
        out_shape=jax.ShapeDtypeStruct((N, 1), jnp.float32),
        grid_spec=pltpu.PrefetchScalarGridSpec(
            num_scalar_prefetch=0,
            grid=(num_tiles,),
            in_specs=[
                pl.BlockSpec((tile_n, C), lambda i: (i, 0)),   # logits tile
                pl.BlockSpec((tile_n, 1), lambda i: (i, 0)),   # labels tile
            ],
            out_specs=pl.BlockSpec((tile_n, 1), lambda i: (i, 0)),
        ),
        compiler_params=pltpu.CompilerParams(
            dimension_semantics=("parallel",),
            vmem_limit_bytes=vmem_limit,
        ),
    )(logits, labels_2d)

    # Slice BEFORE any reduction: only the first N rows are defined.
    loss = out[:N, 0]                                          # (N,) f32
    if reduction == "mean":
        loss = jnp.mean(loss)
    elif reduction == "sum":
        loss = jnp.sum(loss)
    return loss


def _reference(logits, labels, num_classes, epsilon, reduction):
    logits = logits.astype(jnp.float32)
    onehot = jax.nn.one_hot(labels, num_classes, dtype=jnp.float32)
    pt = jnp.sum(onehot * jax.nn.softmax(logits, axis=-1), axis=-1)
    logz = jax.scipy.special.logsumexp(logits, axis=-1)
    ce = logz - jnp.take_along_axis(logits, labels[:, None], axis=-1)[:, 0]
    poly1 = ce + epsilon * (1.0 - pt)
    if reduction == "mean":
        return jnp.mean(poly1)
    if reduction == "sum":
        return jnp.sum(poly1)
    return poly1


if __name__ == "__main__":
    key = jax.random.PRNGKey(0)
    k1, k2, k3, k4, k5, k6 = jax.random.split(key, 6)

    # Case 1: module-default reduction='none', small [N, num_classes] / [N].
    N, NUM_CLASSES = 8, 32
    logits = jax.random.normal(k1, (N, NUM_CLASSES), dtype=jnp.float32)
    labels = jax.random.randint(k2, (N,), 0, NUM_CLASSES, dtype=jnp.int32)
    loss = poly1_cross_entropy_loss(logits, labels, num_classes=NUM_CLASSES,
                                    epsilon=1.0, reduction="none")
    loss = jax.block_until_ready(loss)
    ref = _reference(logits, labels, NUM_CLASSES, 1.0, "none")
    assert loss.shape == (N,)
    assert jnp.allclose(loss, ref, atol=1e-5, rtol=1e-5), (loss, ref)

    # Case 2: ragged N (partial last block, no wrapper pad), non-lane-aligned C, mean.
    N2, C2 = 10, 100
    logits2 = jax.random.normal(k3, (N2, C2), dtype=jnp.float32)
    labels2 = jax.random.randint(k4, (N2,), 0, C2, dtype=jnp.int32)
    loss2 = poly1_cross_entropy_loss(logits2, labels2, num_classes=C2,
                                     epsilon=2.0, reduction="mean")
    loss2 = jax.block_until_ready(loss2)
    ref2 = _reference(logits2, labels2, C2, 2.0, "mean")
    assert jnp.allclose(loss2, ref2, atol=1e-5, rtol=1e-5), (loss2, ref2)

    # Case 3: bf16 logits, non-128-multiple C, 2 grid tiles, sum reduction.
    N3, C3 = 24, 130
    logits3 = jax.random.normal(k5, (N3, C3), dtype=jnp.float32).astype(jnp.bfloat16)
    labels3 = jax.random.randint(k6, (N3,), 0, C3, dtype=jnp.int32)
    loss3 = poly1_cross_entropy_loss(logits3, labels3, num_classes=C3,
                                     epsilon=1.0, reduction="sum")
    loss3 = jax.block_until_ready(loss3)
    ref3 = _reference(logits3, labels3, C3, 1.0, "sum")
    assert jnp.allclose(loss3, ref3, atol=1e-3, rtol=1e-4), (loss3, ref3)

    print("KERNEL_OK")
</pallas_src>

<mosaic_0001>
module attributes {stable_mosaic.version = 11 : i64} {
  func.func @_poly1_ce_kernel(%arg0: i32, %arg1: memref<8x32xf32, #tpu.memory_space<vmem>>, %arg2: memref<8x1xi32, #tpu.memory_space<vmem>>, %arg3: memref<8x1xf32, #tpu.memory_space<vmem>>) attributes {dimension_semantics = [#tpu.dimension_semantics<parallel>], iteration_bounds = array<i64: 1>, scalar_prefetch = 0 : i64, scratch_operands = 0 : i64, tpu.core_type = #tpu.core_type<tc>, window_params = [{transform_indices = @transform_0, window_bounds = array<i64: 8, 32>}, {transform_indices = @transform_1, window_bounds = array<i64: 8, 1>}, {transform_indices = @transform_2, window_bounds = array<i64: 8, 1>}]} {
    %c0 = arith.constant 0 : index
    %c0_0 = arith.constant 0 : index
    %0 = vector.load %arg1[%c0, %c0_0] : memref<8x32xf32, #tpu.memory_space<vmem>>, vector<8x32xf32>
    %c0_1 = arith.constant 0 : index
    %c0_2 = arith.constant 0 : index
    %1 = vector.load %arg2[%c0_1, %c0_2] : memref<8x1xi32, #tpu.memory_space<vmem>>, vector<8x1xi32>
    %cst = arith.constant dense<0xFF800000> : vector<8xf32>
    %2 = vector.multi_reduction <maximumf>, %0, %cst [1] : vector<8x32xf32> to vector<8xf32>
    %3 = vector.shape_cast %2 : vector<8xf32> to vector<8x1xf32>
    %4 = tpu.iota {dimensions = array<i32: 1>} : vector<8x32xi32>
    %5 = vector.broadcast %1 : vector<8x1xi32> to vector<8x32xi32>
    %6 = arith.cmpi eq, %4, %5 : vector<8x32xi32>
    %cst_3 = arith.constant 0.000000e+00 : f32
    %7 = vector.broadcast %cst_3 : f32 to vector<8x32xf32>
    %8 = arith.select %6, %0, %7 : vector<8x32xi1>, vector<8x32xf32>
    %cst_4 = arith.constant dense<0.000000e+00> : vector<8xf32>
    %9 = vector.multi_reduction <add>, %8, %cst_4 [1] : vector<8x32xf32> to vector<8xf32>
    %10 = vector.shape_cast %9 : vector<8xf32> to vector<8x1xf32>
    %11 = vector.broadcast %3 : vector<8x1xf32> to vector<8x32xf32>
    %12 = arith.subf %0, %11 : vector<8x32xf32>
    %13 = math.exp %12 : vector<8x32xf32>
    %cst_5 = arith.constant dense<0.000000e+00> : vector<8xf32>
    %14 = vector.multi_reduction <add>, %13, %cst_5 [1] : vector<8x32xf32> to vector<8xf32>
    %15 = vector.shape_cast %14 : vector<8xf32> to vector<8x1xf32>
    %16 = math.log %15 : vector<8x1xf32>
    %17 = arith.addf %3, %16 : vector<8x1xf32>
    %18 = arith.subf %17, %10 : vector<8x1xf32>
    %cst_6 = arith.constant 0.000000e+00 : f32
    %19 = vector.broadcast %cst_6 : f32 to vector<8x1xf32>
    %20 = arith.subf %19, %18 : vector<8x1xf32>
    %21 = math.exp %20 : vector<8x1xf32>
    %cst_7 = arith.constant 1.000000e+00 : f32
    %22 = vector.broadcast %cst_7 : f32 to vector<8x1xf32>
    %23 = arith.subf %22, %21 : vector<8x1xf32>
    %cst_8 = arith.constant 1.000000e+00 : f32
    %24 = vector.broadcast %cst_8 : f32 to vector<8x1xf32>
    %25 = arith.mulf %24, %23 : vector<8x1xf32>
    %26 = arith.addf %18, %25 : vector<8x1xf32>
    %c0_9 = arith.constant 0 : index
    %c0_10 = arith.constant 0 : index
    %27 = vector.load %arg3[%c0_9, %c0_10] : memref<8x1xf32, #tpu.memory_space<vmem>>, vector<8x1xf32>
    tpu.vector_store %arg3[%c0_9, %c0_10], %26 {strides = array<i32>} : memref<8x1xf32, #tpu.memory_space<vmem>>, vector<8x1xf32>,
    return
  }
  func.func @transform_0(%arg0: i32) -> (i32, i32) {
    %c0_i32 = arith.constant 0 : i32
    %c0_i32_0 = arith.constant 0 : i32
    return %arg0, %c0_i32 : i32, i32
  }
  func.func @transform_1(%arg0: i32) -> (i32, i32) {
    %c0_i32 = arith.constant 0 : i32
    %c0_i32_0 = arith.constant 0 : i32
    return %arg0, %c0_i32 : i32, i32
  }
  func.func @transform_2(%arg0: i32) -> (i32, i32) {
    %c0_i32 = arith.constant 0 : i32
    %c0_i32_0 = arith.constant 0 : i32
    return %arg0, %c0_i32 : i32, i32
  }
}

</mosaic_0001>

<bundles_post_ra>
// kernel: tpu_custom_call.1
= control target key start
LH: loop header
LB: loop body
LE: loop exit
PB: predicated region body
PF: predicated region fallthrough
CT: control target
= control target key end

     0   :  { %vm13_vm0 = vcmask 261120   ;;  %v56_v1 = vmov 0   ;;  %v17_v9 = vlaneseq  ;;  %vm42_vm2 = vcmask 7168   ;;  %s84_s0 = inlined_call_operand.vmem [shape: f32[8,32], index: 0, kind: input, shape index: {}]   ;;  %s85_s1 = inlined_call_operand.vmem [shape: s32[8,1], index: 1, kind: input, shape index: {}]   ;;  %s86_s2 = inlined_call_operand.vmem [shape: f32[8,1], index: 2, kind: output, shape index: {}]  }
   0x1   :  { %v11_v0 = vld [vmem:[%s84_s0] sm:$0xff]  ;;  %49 = vset.pattern.permute.xlu0 %v56_v1 }
   0x2   :  { %v14_v2 = vsel %vm13_vm0, %v11_v0, -inf  ;;  %v12_v3 = vld [vmem:[%s85_s1] sm:$0xff]  ;;  %v18_v10 = vand.u32 127, %v17_v9 }
   0x3   :  { %15 = vmax.xlane.f32.xlu0 %v14_v2 }
  0x17   :  { %20 = vperm.xlu0 %49, %v12_v3  }
  0x76   :  { %v16_v4 = vpop.xlane.xlu0 %15 }
  0x77   :  { %v27_v5 = vsub.f32 %v11_v0, %v16_v4 }
  0x79   :  { %v28_v6 = vmul.f32 1.442695, %v27_v5 }
  0x7b   :  { %50 = vpow2.f32 %v28_v6 }
  0x81   :  { %v51_v7 = vpop.eup %50 }
  0x82   :  { %v30_v8 = vsel %vm13_vm0, %v51_v7, 0.0 }
  0x83   :  { %31 = vadd.xlane.f32.xlu1 %v30_v8 }
  0x89   :  { %v21_v11 = vpop.permute.xlu0 %20 }
  0x8a   :  { %vm22_vm1 = vcmp.eq.s32.totalorder %v18_v10, %v21_v11 }
  0x8b   :  { %v23_v12 = vsel %vm22_vm1, %v11_v0, 0.0 }
  0x8c   :  { %v24_v13 = vsel %vm13_vm0, %v23_v12, 0.0 }
  0x8d   :  { %25 = vadd.xlane.f32.xlu1 %v24_v13 }
  0xf6   :  { %v32_v14 = vpop.xlane.xlu1 %31 }
  0xf7   :  { %52 = vlog2.f32 %v32_v14 }
  0xfd   :  { %v53_v15 = vpop.eup %52 }
  0xfe   :  { %v34_v16 = vmul.f32 0.6931472, %v53_v15 }
 0x100   :  { %v35_v17 = vadd.f32 %v34_v16, %v16_v4  ;;  %v26_v18 = vpop.xlane.xlu1 %25 }
 0x102   :  { %v36_v19 = vsub.f32 %v35_v17, %v26_v18 }
 0x104   :  { %v37_v20 = vsub.f32 0.0, %v36_v19 }
 0x106   :  { %v38_v21 = vmul.f32 1.442695, %v37_v20 }
 0x108   :  { %54 = vpow2.f32 %v38_v21 }
 0x10e   :  { %v55_v22 = vpop.eup %54 }
 0x10f   :  { %v40_v23 = vsub.f32 1.0, %v55_v22 }
 0x111   :  { %v41_v24 = vadd.f32 %v40_v23, %v36_v19 }
 0x113   :  { %43 = vst.msk [vmem:[%s86_s2] sm:$0xff] %vm42_vm2, %v41_v24 }

</bundles_post_ra>
